<compile_context>
chip_gen: v6e
topology: v6e:2x2x1
jax: 0.10.0
libtpu: 0.0.40
codegen_flags: <defaults>
</compile_context>

<pallas_src>
import functools

import jax
import jax.numpy as jnp
from jax.experimental import pallas as pl
from jax.experimental.pallas import tpu as pltpu


def _round_up(x, m):
    return (x + m - 1) // m * m


def _is_identity(flip, cos_t, sin_t, dy, dx):
    return ((flip < 0.5) & (cos_t == 1.0) & (sin_t == 0.0)
            & (dy == 0.0) & (dx == 0.0))


def _build_sel(flip, cos_t, sin_t, dy, dx, H, W, d_off, TD, mm_dtype):
    """Selection matrix sel[src_pixel, dst_pixel] for the composed inverse warp.

    Destination pixels live on the lane axis ((1, TD) vectors, lane dense); the only
    sublane-major tensor is the static (HW, 1) source iota, so no (HW, HW) int32
    intermediate is materialized and sel is produced directly in the matmul dtype.
    """
    HW = H * W
    pow2 = (W & (W - 1)) == 0
    shift = W.bit_length() - 1

    dst = jax.lax.broadcasted_iota(jnp.int32, (1, TD), 1) + d_off        # (1, TD)
    if pow2:
        i_int = dst >> shift
        j_int = dst & (W - 1)
    else:
        i_int = dst // W
        j_int = dst - i_int * W
    i = i_int.astype(jnp.float32)
    j = j_int.astype(jnp.float32)

    # --- 3) horizontal flip (applied last in forward): undo on output column.
    jf = jnp.where(flip > 0.5, float(W - 1) - j, j)

    # --- 2) rotation (nearest neighbour, expand=False, fill=0).
    # TODO(synk): floor(s+0.5) / center=(H-1)/2 convention; torchvision NEAREST rounding
    # can differ by <= half a pixel at exact .5 ties.
    cy = (H - 1) * 0.5
    cx = (W - 1) * 0.5
    yr = i - cy
    xr = jf - cx
    sy = cos_t * yr - sin_t * xr + cy
    sx = sin_t * yr + cos_t * xr + cx
    ky = jnp.floor(sy + 0.5)
    kx = jnp.floor(sx + 0.5)
    valid = (ky >= 0) & (ky <= H - 1) & (kx >= 0) & (kx <= W - 1)

    # --- 1) RandomCrop(padding=pad, fill=0) == integer translation.
    gy = ky + dy
    gx = kx + dx
    valid = valid & (gy >= 0) & (gy <= H - 1) & (gx >= 0) & (gx <= W - 1)

    gyi = jnp.clip(gy, 0, H - 1).astype(jnp.int32)
    gxi = jnp.clip(gx, 0, W - 1).astype(jnp.int32)
    src = gyi * W + gxi                                                  # (1, TD)

    src_iota = jax.lax.broadcasted_iota(jnp.int32, (HW, 1), 0)           # (HW, 1)
    # One-hot selection, built directly in the matmul dtype (no bool HW^2 pass).
    return jnp.where((src_iota == src) & valid, 1.0, 0.0).astype(mm_dtype)   # (HW, TD)


def _make_shared_kernel(H, W, TD, num_d, mm_dtype):
    """One transform shared by the whole batch; rows = flattened (image, channel)."""
    HW = H * W

    def kernel(params_ref, x_ref, o_ref):
        # params_ref: SMEM f32[5] = [flip, cos, sin, dy, dx]
        # x_ref: VMEM (TM, HW_src); o_ref: VMEM (TM, TD_dst), lane dense.
        flip = params_ref[0]
        cos_t = params_ref[1]
        sin_t = params_ref[2]
        dy = params_ref[3]
        dx = params_ref[4]

        if num_d == 1:
            d_off = 0
        else:
            d_off = pl.multiple_of(pl.program_id(1) * TD, 128)

        def compute():
            sel = _build_sel(flip, cos_t, sin_t, dy, dx, H, W, d_off, TD, mm_dtype)
            out = jax.lax.dot_general(
                x_ref[...].astype(mm_dtype), sel,
                (((1,), (0,)), ((), ())),                # contract over source pixel
                preferred_element_type=jnp.float32)       # (TM, TD)
            o_ref[...] = out.astype(o_ref.dtype)

        if num_d == 1:
            # Identity fast path: the composed transform is a no-op with nontrivial
            # probability (rot skipped, zero crop offset, no flip) -> plain copy.
            is_id = _is_identity(flip, cos_t, sin_t, dy, dx)

            @pl.when(is_id)
            def _():
                o_ref[...] = x_ref[...]

            @pl.when(jnp.logical_not(is_id))
            def _():
                compute()
        else:
            compute()

    return kernel


def _make_per_image_kernel(H, W, Bn, mm_dtype):
    """Distinct transform per image; Bn images per grid step to amortize step overhead."""
    HW = H * W

    def kernel(params_ref, x_ref, o_ref):
        # params_ref: SMEM f32[N_pad*5]; x_ref/o_ref: VMEM (Bn, C, HW).
        blk = pl.program_id(0)

        @pl.loop(0, Bn)
        def _(b):
            base = 5 * (blk * Bn + b)
            flip = params_ref[base + 0]
            cos_t = params_ref[base + 1]
            sin_t = params_ref[base + 2]
            dy = params_ref[base + 3]
            dx = params_ref[base + 4]
            is_id = _is_identity(flip, cos_t, sin_t, dy, dx)

            @pl.when(is_id)
            def _():
                o_ref[b] = x_ref[b]

            @pl.when(jnp.logical_not(is_id))
            def _():
                # TODO(synk): sel is built untiled ((HW, HW)); for very large images
                # (HW >= 4096) prefer the shared path or add dst-axis tiling here
                # (v7x VMEM is 64 MiB).
                sel = _build_sel(flip, cos_t, sin_t, dy, dx, H, W, 0, HW, mm_dtype)
                out = jax.lax.dot_general(
                    x_ref[b].astype(mm_dtype), sel,
                    (((1,), (0,)), ((), ())),
                    preferred_element_type=jnp.float32)   # (C, HW)
                o_ref[b] = out.astype(o_ref.dtype)

    return kernel


@functools.partial(jax.jit,
                   static_argnames=("use_bf16", "block_m", "block_n", "dst_tile"))
def post_tensor_transform(params, x, *, use_bf16=True, block_m=256, block_n=16,
                          dst_tile=1024):
    """Apply the composed crop/rotate/flip warp.

    params: f32[5] ([flip, cos, sin, dy, dx]; one transform for the whole batch,
            torch-faithful default) or f32[N, 5] (per-image transforms).
    x:      f32/bf16 [N, C, H, W].
    use_bf16=False runs the one-hot matmul in f32 (bit-exact pixels, slower MXU path).
    """
    N, C, H, W = x.shape
    HW = H * W
    mm_dtype = jnp.bfloat16 if (use_bf16 or x.dtype == jnp.bfloat16) else jnp.float32
    params = params.astype(jnp.float32)

    if params.ndim == 1:
        # ---------- shared-params fast path: one sel, one big (M, HW) contraction.
        M = N * C
        x2 = x.reshape(M, HW)
        TM = min(block_m, _round_up(M, 8))
        M_pad = _round_up(M, TM)
        if M_pad != M:
            x2 = jnp.pad(x2, ((0, M_pad - M), (0, 0)))
        # Optional dst-axis tiling of sel (keeps VMEM in check for HW >= 2048 on v7x).
        if HW % 128 == 0 and dst_tile % 128 == 0 and HW % dst_tile == 0 and HW > dst_tile:
            TD = dst_tile
        else:
            TD = HW
        num_m = M_pad // TM
        num_d = HW // TD
        out = pl.pallas_call(
            _make_shared_kernel(H, W, TD, num_d, mm_dtype),
            out_shape=jax.ShapeDtypeStruct((M_pad, HW), x.dtype),
            grid=(num_m, num_d),
            in_specs=[
                pl.BlockSpec(memory_space=pltpu.MemorySpace.SMEM),     # params f32[5]
                pl.BlockSpec((TM, HW), lambda m, d: (m, 0)),           # full src axis
            ],
            out_specs=pl.BlockSpec((TM, TD), lambda m, d: (m, d)),     # lane-dense dst
            compiler_params=pltpu.CompilerParams(
                dimension_semantics=("parallel", "parallel")),         # feeds both TCs on v7x
        )(params, x2)
        return out[:M].reshape(N, C, H, W)

    # ---------- per-image path: Bn images per grid step, each with its own sel.
    assert params.shape == (N, 5)
    Bn = min(block_n, N)
    N_pad = _round_up(N, Bn)
    x3 = x.reshape(N, C, HW)
    if N_pad != N:
        x3 = jnp.pad(x3, ((0, N_pad - N), (0, 0), (0, 0)))
        ident = jnp.tile(jnp.array([[0.0, 1.0, 0.0, 0.0, 0.0]], jnp.float32),
                         (N_pad - N, 1))
        params = jnp.concatenate([params, ident], axis=0)
    out = pl.pallas_call(
        _make_per_image_kernel(H, W, Bn, mm_dtype),
        out_shape=jax.ShapeDtypeStruct((N_pad, C, HW), x.dtype),
        grid=(N_pad // Bn,),
        in_specs=[
            pl.BlockSpec(memory_space=pltpu.MemorySpace.SMEM),         # params f32[N_pad*5]
            pl.BlockSpec((Bn, C, HW), lambda n: (n, 0, 0)),
        ],
        out_specs=pl.BlockSpec((Bn, C, HW), lambda n: (n, 0, 0)),
        compiler_params=pltpu.CompilerParams(
            dimension_semantics=("parallel",)),
    )(params.reshape(-1), x3)
    return out[:N].reshape(N, C, H, W)


def make_transform_params(key, N, H, W, pad, max_rot_deg,
                          crop_p=0.8, rot_p=0.5, flip_p=0.5, per_image=False):
    """Draw transform parameters.  per_image=False matches the torch module applied to a
    batched tensor (one transform for the whole batch) and returns shape (5,);
    per_image=True returns (N, 5)."""
    # TODO(synk): host-side `random.random()` gating of ProbTransform is modelled with
    # jax.random draws; per-call RNG stream identity with PyTorch is not reproducible.
    B = N if per_image else 1
    k1, k2, k3, k4, k5, k6 = jax.random.split(key, 6)
    apply_crop = jax.random.uniform(k1, (B,)) < crop_p
    oy = jax.random.randint(k2, (B,), 0, 2 * pad + 1)
    ox = jax.random.randint(k3, (B,), 0, 2 * pad + 1)
    dy = jnp.where(apply_crop, (oy - pad).astype(jnp.float32), 0.0)
    dx = jnp.where(apply_crop, (ox - pad).astype(jnp.float32), 0.0)
    apply_rot = jax.random.uniform(k4, (B,)) < rot_p
    ang = jax.random.uniform(k5, (B,), minval=-max_rot_deg, maxval=max_rot_deg)
    ang = jnp.where(apply_rot, ang, 0.0) * (jnp.pi / 180.0)
    flip = (jax.random.uniform(k6, (B,)) < flip_p).astype(jnp.float32)
    rows = jnp.stack([flip, jnp.cos(ang), jnp.sin(ang), dy, dx], axis=-1)
    rows = rows.astype(jnp.float32)
    return rows if per_image else rows[0]


def reference(params, x):
    """Pure-JAX reference of the same composed warp (validation only)."""
    N, C, H, W = x.shape
    if params.ndim == 1:
        params = jnp.broadcast_to(params[None, :], (N, 5))
    ii, jj = jnp.meshgrid(jnp.arange(H, dtype=jnp.float32),
                          jnp.arange(W, dtype=jnp.float32), indexing="ij")
    outs = []
    for n in range(N):
        flip, c, s, dy, dx = (params[n, k] for k in range(5))
        jf = jnp.where(flip > 0.5, (W - 1) - jj, jj)
        cy, cx = (H - 1) * 0.5, (W - 1) * 0.5
        yr, xr = ii - cy, jf - cx
        sy = c * yr - s * xr + cy
        sx = s * yr + c * xr + cx
        ky = jnp.floor(sy + 0.5)
        kx = jnp.floor(sx + 0.5)
        valid = (ky >= 0) & (ky <= H - 1) & (kx >= 0) & (kx <= W - 1)
        gy, gx = ky + dy, kx + dx
        valid = valid & (gy >= 0) & (gy <= H - 1) & (gx >= 0) & (gx <= W - 1)
        gyi = jnp.clip(gy, 0, H - 1).astype(jnp.int32)
        gxi = jnp.clip(gx, 0, W - 1).astype(jnp.int32)
        gathered = x[n][:, gyi, gxi]                           # (C, H, W)
        outs.append(jnp.where(valid[None], gathered, 0.0))
    return jnp.stack(outs)


if __name__ == "__main__":
    key = jax.random.PRNGKey(0)
    kx, kp1, kp2 = jax.random.split(key, 3)

    # opt.input_height = opt.input_width = 16, opt.random_crop = 2,
    # opt.random_rotation = 10, opt.dataset = 'cifar10' (small test shapes).
    N, C, H, W = 2, 4, 16, 16
    x = jax.random.uniform(kx, (N, C, H, W), dtype=jnp.float32)

    # Batch-level transform (torch module applied to a batched tensor) -> shared path.
    p_shared = make_transform_params(kp1, N, H, W, pad=2, max_rot_deg=10.0)      # (5,)
    ref_shared = reference(p_shared, x)

    y_exact = jax.block_until_ready(post_tensor_transform(p_shared, x, use_bf16=False))
    assert y_exact.shape == x.shape and y_exact.dtype == x.dtype
    assert jnp.allclose(y_exact, ref_shared, atol=1e-5), "mismatch (shared, exact f32)"

    y_bf16 = jax.block_until_ready(post_tensor_transform(p_shared, x))           # default bf16
    assert jnp.allclose(y_bf16, ref_shared, atol=1e-2), "mismatch (shared, bf16 matmul)"

    # Distinct per-image transforms (exercises the blocked per-image path).
    p_per = make_transform_params(kp2, N, H, W, pad=2, max_rot_deg=10.0, per_image=True)
    y2 = jax.block_until_ready(post_tensor_transform(p_per, x, use_bf16=False))
    assert jnp.allclose(y2, reference(p_per, x), atol=1e-5), "mismatch (per-image, exact f32)"

    print("KERNEL_OK")
</pallas_src>

<mosaic_0001>
module attributes {stable_mosaic.version = 11 : i64} {
  func.func @kernel(%arg0: i32, %arg1: i32, %arg2: memref<5xf32, #tpu.memory_space<smem>>, %arg3: memref<8x256xf32, #tpu.memory_space<vmem>>, %arg4: memref<8x256xf32, #tpu.memory_space<vmem>>) attributes {dimension_semantics = [#tpu.dimension_semantics<parallel>, #tpu.dimension_semantics<parallel>], iteration_bounds = array<i64: 1, 1>, scalar_prefetch = 0 : i64, scratch_operands = 0 : i64, tpu.core_type = #tpu.core_type<tc>, window_params = [{transform_indices = @transform_0, window_bounds = array<i64: 5>}, {transform_indices = @transform_1, window_bounds = array<i64: 8, 256>}, {transform_indices = @transform_2, window_bounds = array<i64: 8, 256>}]} {
    %c0 = arith.constant 0 : index
    %0 = memref.load %arg2[%c0] : memref<5xf32, #tpu.memory_space<smem>>
    %c1 = arith.constant 1 : index
    %1 = memref.load %arg2[%c1] : memref<5xf32, #tpu.memory_space<smem>>
    %c2 = arith.constant 2 : index
    %2 = memref.load %arg2[%c2] : memref<5xf32, #tpu.memory_space<smem>>
    %c3 = arith.constant 3 : index
    %3 = memref.load %arg2[%c3] : memref<5xf32, #tpu.memory_space<smem>>
    %c4 = arith.constant 4 : index
    %4 = memref.load %arg2[%c4] : memref<5xf32, #tpu.memory_space<smem>>
    %cst = arith.constant 5.000000e-01 : f32
    %5 = arith.cmpf olt, %0, %cst : f32
    %cst_0 = arith.constant 1.000000e+00 : f32
    %6 = arith.cmpf oeq, %1, %cst_0 : f32
    %7 = arith.andi %5, %6 : i1
    %cst_1 = arith.constant 0.000000e+00 : f32
    %8 = arith.cmpf oeq, %2, %cst_1 : f32
    %9 = arith.andi %7, %8 : i1
    %cst_2 = arith.constant 0.000000e+00 : f32
    %10 = arith.cmpf oeq, %3, %cst_2 : f32
    %11 = arith.andi %9, %10 : i1
    %cst_3 = arith.constant 0.000000e+00 : f32
    %12 = arith.cmpf oeq, %4, %cst_3 : f32
    %13 = arith.andi %11, %12 : i1
    %14 = arith.extui %13 : i1 to i32
    %c0_i32 = arith.constant 0 : i32
    %15 = arith.cmpi ne, %14, %c0_i32 : i32
    scf.if %15 {
      %c0_5 = arith.constant 0 : index
      %c0_6 = arith.constant 0 : index
      %19 = vector.load %arg3[%c0_5, %c0_6] : memref<8x256xf32, #tpu.memory_space<vmem>>, vector<8x256xf32>
      %c0_7 = arith.constant 0 : index
      %c0_8 = arith.constant 0 : index
      %20 = vector.load %arg4[%c0_7, %c0_8] : memref<8x256xf32, #tpu.memory_space<vmem>>, vector<8x256xf32>
      tpu.vector_store %arg4[%c0_7, %c0_8], %19 {strides = array<i32>} : memref<8x256xf32, #tpu.memory_space<vmem>>, vector<8x256xf32>,
    } else {
    }
    %true = arith.constant true
    %16 = arith.xori %13, %true : i1
    %17 = arith.extui %16 : i1 to i32
    %c0_i32_4 = arith.constant 0 : i32
    %18 = arith.cmpi ne, %17, %c0_i32_4 : i32
    scf.if %18 {
      %19 = tpu.iota {dimensions = array<i32: 1>} : vector<1x256xi32>
      %c0_i32_5 = arith.constant 0 : i32
      %20 = vector.broadcast %c0_i32_5 : i32 to vector<1x256xi32>
      %21 = arith.addi %19, %20 : vector<1x256xi32>
      %c4_i32 = arith.constant 4 : i32
      %22 = vector.broadcast %c4_i32 : i32 to vector<1x256xi32>
      %23 = arith.shrsi %21, %22 : vector<1x256xi32>
      %c15_i32 = arith.constant 15 : i32
      %24 = vector.broadcast %c15_i32 : i32 to vector<1x256xi32>
      %25 = arith.andi %21, %24 : vector<1x256xi32>
      %26 = arith.sitofp %23 : vector<1x256xi32> to vector<1x256xf32>
      %27 = arith.sitofp %25 : vector<1x256xi32> to vector<1x256xf32>
      %cst_6 = arith.constant 5.000000e-01 : f32
      %28 = arith.cmpf ogt, %0, %cst_6 : f32
      %cst_7 = arith.constant 1.500000e+01 : f32
      %29 = vector.broadcast %cst_7 : f32 to vector<1x256xf32>
      %30 = arith.subf %29, %27 : vector<1x256xf32>
      %31 = arith.select %28, %30, %27 : vector<1x256xf32>
      %cst_8 = arith.constant 7.500000e+00 : f32
      %32 = vector.broadcast %cst_8 : f32 to vector<1x256xf32>
      %33 = arith.subf %26, %32 : vector<1x256xf32>
      %cst_9 = arith.constant 7.500000e+00 : f32
      %34 = vector.broadcast %cst_9 : f32 to vector<1x256xf32>
      %35 = arith.subf %31, %34 : vector<1x256xf32>
      %36 = vector.broadcast %1 : f32 to vector<1x256xf32>
      %37 = arith.mulf %36, %33 : vector<1x256xf32>
      %38 = vector.broadcast %2 : f32 to vector<1x256xf32>
      %39 = arith.mulf %38, %35 : vector<1x256xf32>
      %40 = arith.subf %37, %39 : vector<1x256xf32>
      %cst_10 = arith.constant 7.500000e+00 : f32
      %41 = vector.broadcast %cst_10 : f32 to vector<1x256xf32>
      %42 = arith.addf %40, %41 : vector<1x256xf32>
      %43 = vector.broadcast %2 : f32 to vector<1x256xf32>
      %44 = arith.mulf %43, %33 : vector<1x256xf32>
      %45 = vector.broadcast %1 : f32 to vector<1x256xf32>
      %46 = arith.mulf %45, %35 : vector<1x256xf32>
      %47 = arith.addf %44, %46 : vector<1x256xf32>
      %cst_11 = arith.constant 7.500000e+00 : f32
      %48 = vector.broadcast %cst_11 : f32 to vector<1x256xf32>
      %49 = arith.addf %47, %48 : vector<1x256xf32>
      %cst_12 = arith.constant 5.000000e-01 : f32
      %50 = vector.broadcast %cst_12 : f32 to vector<1x256xf32>
      %51 = arith.addf %42, %50 : vector<1x256xf32>
      %52 = math.floor %51 : vector<1x256xf32>
      %cst_13 = arith.constant 5.000000e-01 : f32
      %53 = vector.broadcast %cst_13 : f32 to vector<1x256xf32>
      %54 = arith.addf %49, %53 : vector<1x256xf32>
      %55 = math.floor %54 : vector<1x256xf32>
      %cst_14 = arith.constant 0.000000e+00 : f32
      %56 = vector.broadcast %cst_14 : f32 to vector<1x256xf32>
      %57 = arith.cmpf oge, %52, %56 : vector<1x256xf32>
      %cst_15 = arith.constant 1.500000e+01 : f32
      %58 = vector.broadcast %cst_15 : f32 to vector<1x256xf32>
      %59 = arith.cmpf ole, %52, %58 : vector<1x256xf32>
      %60 = arith.andi %57, %59 : vector<1x256xi1>
      %cst_16 = arith.constant 0.000000e+00 : f32
      %61 = vector.broadcast %cst_16 : f32 to vector<1x256xf32>
      %62 = arith.cmpf oge, %55, %61 : vector<1x256xf32>
      %63 = arith.andi %60, %62 : vector<1x256xi1>
      %cst_17 = arith.constant 1.500000e+01 : f32
      %64 = vector.broadcast %cst_17 : f32 to vector<1x256xf32>
      %65 = arith.cmpf ole, %55, %64 : vector<1x256xf32>
      %66 = arith.andi %63, %65 : vector<1x256xi1>
      %67 = vector.broadcast %3 : f32 to vector<1x256xf32>
      %68 = arith.addf %52, %67 : vector<1x256xf32>
      %69 = vector.broadcast %4 : f32 to vector<1x256xf32>
      %70 = arith.addf %55, %69 : vector<1x256xf32>
      %cst_18 = arith.constant 0.000000e+00 : f32
      %71 = vector.broadcast %cst_18 : f32 to vector<1x256xf32>
      %72 = arith.cmpf oge, %68, %71 : vector<1x256xf32>
      %73 = arith.andi %66, %72 : vector<1x256xi1>
      %cst_19 = arith.constant 1.500000e+01 : f32
      %74 = vector.broadcast %cst_19 : f32 to vector<1x256xf32>
      %75 = arith.cmpf ole, %68, %74 : vector<1x256xf32>
      %76 = arith.andi %73, %75 : vector<1x256xi1>
      %cst_20 = arith.constant 0.000000e+00 : f32
      %77 = vector.broadcast %cst_20 : f32 to vector<1x256xf32>
      %78 = arith.cmpf oge, %70, %77 : vector<1x256xf32>
      %79 = arith.andi %76, %78 : vector<1x256xi1>
      %cst_21 = arith.constant 1.500000e+01 : f32
      %80 = vector.broadcast %cst_21 : f32 to vector<1x256xf32>
      %81 = arith.cmpf ole, %70, %80 : vector<1x256xf32>
      %82 = arith.andi %79, %81 : vector<1x256xi1>
      %c0_i32_22 = arith.constant 0 : i32
      %c15_i32_23 = arith.constant 15 : i32
      %83 = arith.sitofp %c0_i32_22 : i32 to f32
      %84 = vector.broadcast %83 : f32 to vector<1x256xf32>
      %85 = arith.maximumf %84, %68 : vector<1x256xf32>
      %86 = arith.sitofp %c15_i32_23 : i32 to f32
      %87 = vector.broadcast %86 : f32 to vector<1x256xf32>
      %88 = arith.minimumf %87, %85 : vector<1x256xf32>
      %89 = arith.fptosi %88 : vector<1x256xf32> to vector<1x256xi32>
      %c0_i32_24 = arith.constant 0 : i32
      %c15_i32_25 = arith.constant 15 : i32
      %90 = arith.sitofp %c0_i32_24 : i32 to f32
      %91 = vector.broadcast %90 : f32 to vector<1x256xf32>
      %92 = arith.maximumf %91, %70 : vector<1x256xf32>
      %93 = arith.sitofp %c15_i32_25 : i32 to f32
      %94 = vector.broadcast %93 : f32 to vector<1x256xf32>
      %95 = arith.minimumf %94, %92 : vector<1x256xf32>
      %96 = arith.fptosi %95 : vector<1x256xf32> to vector<1x256xi32>
      %c16_i32 = arith.constant 16 : i32
      %97 = vector.broadcast %c16_i32 : i32 to vector<1x256xi32>
      %98 = arith.muli %89, %97 : vector<1x256xi32>
      %99 = arith.addi %98, %96 : vector<1x256xi32>
      %100 = tpu.iota {dimensions = array<i32: 0>} : vector<256x1xi32>
      %101 = vector.broadcast %100 : vector<256x1xi32> to vector<256x256xi32>
      %102 = vector.broadcast %99 : vector<1x256xi32> to vector<256x256xi32>
      %103 = arith.cmpi eq, %101, %102 : vector<256x256xi32>
      %104 = vector.broadcast %82 : vector<1x256xi1> to vector<256x256xi1>
      %105 = arith.andi %103, %104 : vector<256x256xi1>
      %cst_26 = arith.constant 1.000000e+00 : f32
      %cst_27 = arith.constant 0.000000e+00 : f32
      %106 = vector.broadcast %cst_26 : f32 to vector<256x256xf32>
      %107 = vector.broadcast %cst_27 : f32 to vector<256x256xf32>
      %108 = arith.select %105, %106, %107 : vector<256x256xi1>, vector<256x256xf32>
      %c0_28 = arith.constant 0 : index
      %c0_29 = arith.constant 0 : index
      %109 = vector.load %arg3[%c0_28, %c0_29] : memref<8x256xf32, #tpu.memory_space<vmem>>, vector<8x256xf32>
      %cst_30 = arith.constant dense<0.000000e+00> : vector<8x256xf32>
      %110 = tpu.matmul %109, %108, %cst_30 {dimension_numbers = #tpu.dot_dimension_numbers<[1], [0], [0], [1], [0, 0, 1, 1], [], []>} : vector<8x256xf32>, vector<256x256xf32>, vector<8x256xf32> -> vector<8x256xf32>
      %c0_31 = arith.constant 0 : index
      %c0_32 = arith.constant 0 : index
      %111 = vector.load %arg4[%c0_31, %c0_32] : memref<8x256xf32, #tpu.memory_space<vmem>>, vector<8x256xf32>
      tpu.vector_store %arg4[%c0_31, %c0_32], %110 {strides = array<i32>} : memref<8x256xf32, #tpu.memory_space<vmem>>, vector<8x256xf32>,
    } else {
    }
    return
  }
  func.func @transform_0(%arg0: i32, %arg1: i32) -> i32 {
    %c0_i32 = arith.constant 0 : i32
    %c0_i32_0 = arith.constant 0 : i32
    return %c0_i32 : i32
  }
  func.func @transform_1(%arg0: i32, %arg1: i32) -> (i32, i32) {
    %c0_i32 = arith.constant 0 : i32
    %c0_i32_0 = arith.constant 0 : i32
    return %arg0, %c0_i32 : i32, i32
  }
  func.func @transform_2(%arg0: i32, %arg1: i32) -> (i32, i32) {
    %c0_i32 = arith.constant 0 : i32
    return %arg0, %arg1 : i32, i32
  }
}

</mosaic_0001>

<bundles_post_ra>
// kernel: post_tensor_transform.1
= control target key start
LH: loop header
LB: loop body
LE: loop exit
PB: predicated region body
PF: predicated region fallthrough
CT: control target
= control target key end

     0   :  { %7 = vsyncpa [#allocation3], 0  ;;  %s934_s0 = inlined_call_operand.vmem [shape: f32[5], index: 0, kind: input, shape index: {}]   ;;  %s935_s1 = inlined_call_operand.vmem [shape: f32[8,256], index: 1, kind: input, shape index: {}]   ;;  %s936_s2 = inlined_call_operand.vmem [shape: f32[8,256], index: 2, kind: output, shape index: {}]  }
   0x1   :  { %s14_s11 = sshll.u32 %s934_s0, 4  ;;  %s15_s11 = int_to_ptr.vmem [resolvable:$true] %s14_s11 }
   0x2   :  { %s544_s12 = scalar_lea.vmem %s15_s11, 16  ;;  %p549_p1 = scmp.lt.s32.totalorder %s15_s11, %s15_s11 }
   0x3   :  { %p545_p0 = scmp.ne.s32.totalorder %s15_s11, %s544_s12  ;;  %p550_p2 = scmp.lt.s32.totalorder %s544_s12, %s544_s12 }
   0x5   :  { %p551_p3 = por %p550_p2, %p549_p1 }
   0x7   :  { %p552_p4 = pnand %p551_p3, %p545_p0 }
   0x9   :  { %555 = shalt.err (!%p552_p4)
}
   0xa   :  { %s558_s13 = smov [#allocation2]  }
   0xb   :  { %17 = dma.vmem_to_smem %s15_s11, 16, %s558_s13, [#allocation3]  }
   0xc   :  { %556 = dma.done.wait [#allocation3], 16  }
   0xd   :  { %557 = vsyncadd [#allocation3], 4294967280 }
   0xe   :  { %23 = sfence }
   0xf   :  { %s24_s14 = sld [smem:[#allocation2]] }
  0x10   :  { %s579_s15 = sld [smem:[#allocation2 + $0x1]] }
  0x11   :  { %s581_s16 = sld [smem:[#allocation2 + $0x2]] }
  0x12   :  { %s583_s0 = sld [smem:[#allocation2 + $0x3]] }
  0x13   :  { %s586_s17 = sld [smem:[#allocation2 + $0x4]] }
  0x15   :  { %p29_p5 = scmp.lt.f32.partialorder %s24_s14, 0.5 }
  0x16   :  { %p30_p6 = scmp.eq.f32.partialorder %s579_s15, 1.0 }
  0x17   :  { %p33_p8 = scmp.eq.f32.partialorder %s581_s16, 0.0 }
  0x18   :  { %p31_p7 = pnand %p30_p6, %p29_p5  ;;  %p36_p11 = scmp.eq.f32.partialorder %s583_s0, 0.0 }
  0x19   :  { %p39_p0 = scmp.eq.f32.partialorder %s586_s17, 0.0 }
  0x1a   :  { %p32_p9 = pneg %p31_p7 }
  0x1c   :  { %p34_p10 = pnand %p33_p8, %p32_p9 }
  0x1e   :  { %p35_p12 = pneg %p34_p10 }
  0x20   :  { %p37_p13 = pnand %p36_p11, %p35_p12 }
  0x22   :  { %p38_p1 = pneg %p37_p13 }
  0x24   :  { %p40_p2 = pnand %p39_p0, %p38_p1 }
  0x26   :  { %43 = sbr.rel (%p40_p2) target bundleno = 45 (0x2d), region = 17 }
  0x2b   :  { %v44_v0 = vld [vmem:[%s935_s1] sm:$0xff]  ;;  %v45_v1 = vld [vmem:[%s935_s1 + $0x8] sm:$0xff] }
  0x2c   :  { %46 = vst [vmem:[%s936_s2] sm:$0xff] %v44_v0  ;;  %47 = vst [vmem:[%s936_s2 + $0x8] sm:$0xff] %v45_v1 }
  0x2d PF:  { %50 = sbr.rel (!%p40_p2) target bundleno = 348 (0x15c), region = 21  ;;  %v51_v2 = vlaneseq (%p40_p2)  ;;  %p62_p3 = scmp.gt.f32.partialorder (%p40_p2), %s24_s14, 0.5  ;;  %v382_v3 = vld [vmem:[%s935_s1 + $0x8] sm:$0xff] (%p40_p2)  ;;  %v74_v16 = vstv (%p40_p2), %s579_s15  ;;  %v77_v20 = vstv (%p40_p2), %s581_s16  ;;  %v114_v49 = vstv (%p40_p2), %s583_s0 }
  0x2e   :  { %447 = vmatprep.mubr.f32.mxu0 (%p40_p2), %v382_v3  ;;  %v117_v50 = vstv (%p40_p2), %s586_s17 }
  0x2f   :  { %v52_v4 = vand.u32 (%p40_p2), 127, %v51_v2 }
  0x31   :  { %v53_v5 = vadd.s32 (%p40_p2), 128, %v52_v4  ;;  %v54_v6 = vshra.s32 (%p40_p2), %v52_v4, 4  ;;  %v56_v8 = vand.u32 (%p40_p2), 15, %v52_v4  ;;  %v620_v4 = vshrl.u32 (%p40_p2), %v51_v2, 7 }
  0x32   :  { %s65_s28 = scalar_select %p62_p3, 1, 0 }
  0x33   :  { %v55_v9 = vshra.s32 %v53_v5, 4  ;;  %v57_v10 = vand.u32 15, %v53_v5  ;;  %v58_v11 = vcvt.s32.f32 %v54_v6  ;;  %v60_v12 = vcvt.s32.f32 %v56_v8 }
  0x34   :  { %v66_v7 = vstv %s65_s28 }
  0x35   :  { %v59_v13 = vcvt.s32.f32 %v55_v9  ;;  %v61_v14 = vcvt.s32.f32 %v57_v10  ;;  %vm67_vm0 = vcmp.eq.s32.totalorder %v66_v7, 1  ;;  %v465_v15 = vadd.f32 -7.5, %v58_v11 }
  0x36   :  { %v63_v17 = vsub.f32 15.0, %v60_v12  ;;  %v559_v9 = vmov 0  }
  0x37   :  { %v64_v18 = vsub.f32 15.0, %v61_v14  ;;  %v466_v19 = vadd.f32 -7.5, %v59_v13  ;;  %v75_v24 = vmul.f32 %v465_v15, %v74_v16  ;;  %v84_v25 = vmul.f32 %v465_v15, %v77_v20 }
  0x38   :  { %v68_v21 = vsel %vm67_vm0, %v63_v17, %v60_v12  ;;  %v168_v13 = vadd.s32 120, %v620_v4 }
  0x39   :  { %v69_v22 = vsel %vm67_vm0, %v64_v18, %v61_v14  ;;  %v467_v23 = vadd.f32 -7.5, %v68_v21  ;;  %v76_v27 = vmul.f32 %v466_v19, %v74_v16  ;;  %v85_v28 = vmul.f32 %v466_v19, %v77_v20 }
  0x3a   :  { %v468_v26 = vadd.f32 -7.5, %v69_v22  ;;  %v167_v14 = vadd.s32 112, %v620_v4  ;;  %v166_v18 = vadd.s32 104, %v620_v4  ;;  %v560_v21 = vmov 1.0  }
  0x3b   :  { %v78_v29 = vmul.f32 %v467_v23, %v77_v20  ;;  %v86_v30 = vmul.f32 %v467_v23, %v74_v16  ;;  %v164_v22 = vadd.s32 88, %v620_v4  ;;  %v163_v23 = vadd.s32 80, %v620_v4 }
  0x3c   :  { %v79_v31 = vmul.f32 %v468_v26, %v77_v20  ;;  %v87_v32 = vmul.f32 %v468_v26, %v74_v16  ;;  %v165_v20 = vadd.s32 96, %v620_v4  ;;  %v160_v26 = vadd.s32 56, %v620_v4 }
  0x3d   :  { %v80_v33 = vsub.f32 %v75_v24, %v78_v29  ;;  %v88_v34 = vadd.f32 %v86_v30, %v84_v25  ;;  %v162_v24 = vadd.s32 72, %v620_v4  ;;  %v161_v25 = vadd.s32 64, %v620_v4 }
  0x3e   :  { %v81_v35 = vsub.f32 %v76_v27, %v79_v31  ;;  %v89_v36 = vadd.f32 %v87_v32, %v85_v28  ;;  %v159_v27 = vadd.s32 48, %v620_v4  ;;  %v158_v28 = vadd.s32 40, %v620_v4 }
  0x3f   :  { %v82_v37 = vadd.f32 7.5, %v80_v33  ;;  %v90_v38 = vadd.f32 7.5, %v88_v34  ;;  %v157_v29 = vadd.s32 32, %v620_v4  ;;  %v156_v30 = vadd.s32 24, %v620_v4 }
  0x40   :  { %v83_v39 = vadd.f32 7.5, %v81_v35  ;;  %v91_v40 = vadd.f32 7.5, %v89_v36  ;;  %v155_v31 = vadd.s32 16, %v620_v4  ;;  %v154_v32 = vadd.s32 8, %v620_v4 }
  0x41   :  { %v92_v41 = vadd.f32 0.5, %v82_v37  ;;  %v96_v42 = vadd.f32 0.5, %v90_v38  ;;  %v184_v33 = vadd.s32 248, %v620_v4  ;;  %v183_v34 = vadd.s32 240, %v620_v4 }
  0x42   :  { %v93_v43 = vadd.f32 0.5, %v83_v39  ;;  %v97_v44 = vadd.f32 0.5, %v91_v40  ;;  %v182_v35 = vadd.s32 232, %v620_v4  ;;  %v181_v36 = vadd.s32 224, %v620_v4 }
  0x43   :  { %v94_v45 = vfloor.f32 %v92_v41  ;;  %v98_v46 = vfloor.f32 %v96_v42  ;;  %v180_v37 = vadd.s32 216, %v620_v4  ;;  %v179_v38 = vadd.s32 208, %v620_v4 }
  0x44   :  { %v95_v47 = vfloor.f32 %v93_v43  ;;  %v99_v48 = vfloor.f32 %v97_v44  ;;  %v178_v39 = vadd.s32 200, %v620_v4  ;;  %v177_v40 = vadd.s32 192, %v620_v4 }
  0x45   :  { %vm100_vm1 = vcmp.ge.f32.partialorder %v94_v45, 0.0  ;;  %vm102_vm2 = vcmp.le.f32.partialorder %v94_v45, 15.0  ;;  %v115_v54 = vadd.f32 %v114_v49, %v94_v45  ;;  %v118_v55 = vadd.f32 %v117_v50, %v98_v46 }
  0x46   :  { %vm101_vm3 = vcmp.ge.f32.partialorder %v95_v47, 0.0  ;;  %vm103_vm4 = vcmp.le.f32.partialorder %v95_v47, 15.0  ;;  %vm107_vm5 = vcmp.ge.f32.partialorder %v99_v48, 0.0  ;;  %vm111_vm6 = vcmp.le.f32.partialorder %v99_v48, 15.0  ;;  %vm611_vm7 = vmand %vm100_vm1, %vm102_vm2 }
  0x47   :  { %vm105_vm8 = vmand %vm101_vm3, %vm103_vm4  ;;  %v116_v52 = vadd.f32 %v114_v49, %v95_v47  ;;  %v119_v53 = vadd.f32 %v117_v50, %v99_v48  ;;  %vm106_vm1 = vcmp.ge.f32.partialorder %v98_v46, 0.0  ;;  %v136_v58 = vmax.f32 %v115_v54, 0.0  ;;  %v381_v49 = vld [vmem:[%s935_s1] sm:$0xff] }
  0x48   :  { %vm109_vm9 = vmand %vm105_vm8, %vm107_vm5  ;;  %v142_v59 = vmax.f32 %v118_v55, 0.0  ;;  %vm110_vm3 = vcmp.le.f32.partialorder %v98_v46, 15.0  ;;  %vm120_vm5 = vcmp.ge.f32.partialorder %v115_v54, 0.0  ;;  %vm124_vm8 = vcmp.le.f32.partialorder %v115_v54, 15.0 }
  0x49   :  { %vm113_vm10 = vmand %vm109_vm9, %vm111_vm6  ;;  %vm121_vm11 = vcmp.ge.f32.partialorder %v116_v52, 0.0  ;;  %vm125_vm12 = vcmp.le.f32.partialorder %v116_v52, 15.0  ;;  %vm129_vm13 = vcmp.ge.f32.partialorder %v119_v53, 0.0  ;;  %vm133_vm15 = vcmp.le.f32.partialorder %v119_v53, 15.0 }
  0x4a   :  { %vm123_vm14 = vmand %vm113_vm10, %vm121_vm11  ;;  %v137_v56 = vmax.f32 %v116_v52, 0.0  ;;  %v143_v57 = vmax.f32 %v119_v53, 0.0  ;;  %v138_v63 = vmin.f32 %v136_v58, 15.0  ;;  %v144_v0 = vmin.f32 %v142_v59, 15.0 }
  0x4b   :  { %vm127_vm0 = vmand %vm123_vm14, %vm125_vm12  ;;  %vm128_vm10 = vcmp.ge.f32.partialorder %v118_v55, 0.0  ;;  %vm132_vm12 = vcmp.le.f32.partialorder %v118_v55, 15.0  ;;  %v176_v41 = vadd.s32 184, %v620_v4  ;;  %v175_v42 = vadd.s32 176, %v620_v4 }
  0x4c   :  { %vm131_vm2 = vmand %vm127_vm0, %vm129_vm13  ;;  %v139_v60 = vmin.f32 %v137_v56, 15.0  ;;  %v145_v61 = vmin.f32 %v143_v57, 15.0  ;;  %v533_v5 = vtrunc.f32 %v138_v63  ;;  %v537_v6 = vtrunc.f32 %v144_v0 }
  0x4d   :  { %vm615_vm4 = vmand %vm131_vm2, %vm133_vm15  ;;  %v174_v43 = vadd.s32 168, %v620_v4  ;;  %v173_v44 = vadd.s32 160, %v620_v4  ;;  %v172_v45 = vadd.s32 152, %v620_v4  ;;  %v171_v46 = vadd.s32 144, %v620_v4 }
  0x4e   :  { %v535_v1 = vtrunc.f32 %v139_v60  ;;  %v539_v3 = vtrunc.f32 %v145_v61  ;;  %vm108_vm6 = vmand %vm611_vm7, %vm106_vm1  ;;  %v626_v10 = vsel %vm615_vm4, 1, %v559_v9  ;;  %v534_v2 = vcvt.f32.s32 %v533_v5 }
  0x4f   :  { %vm112_vm9 = vmand %vm108_vm6, %vm110_vm3  ;;  %v538_v11 = vcvt.f32.s32 %v537_v6  ;;  %vm252_vm15 = vcmp.eq.s32.totalorder %v626_v10, 1  ;;  %v170_v47 = vadd.s32 136, %v620_v4  ;;  %v169_v48 = vadd.s32 128, %v620_v4 }
  0x50   :  { %v536_v7 = vcvt.f32.s32 %v535_v1  ;;  %v540_v8 = vcvt.f32.s32 %v539_v3  ;;  %vm122_vm11 = vmand %vm112_vm9, %vm120_vm5  ;;  %v148_v15 = vmul.u32 16, %v534_v2 }
  0x51   :  { %vm126_vm13 = vmand %vm122_vm11, %vm124_vm8 }
  0x52   :  { %v149_v12 = vmul.u32 16, %v536_v7  ;;  %vm130_vm7 = vmand %vm126_vm13, %vm128_vm10  ;;  %v636_v19 = vadd.s32 %v538_v11, %v148_v15 }
  0x53   :  { %vm134_vm14 = vmand %vm130_vm7, %vm132_vm12 }
  0x54   :  { %v630_v16 = vadd.s32 %v540_v8, %v149_v12  ;;  %v633_v17 = vsel %vm134_vm14, 1, %v559_v9  ;;  %vm215_vm4 = vcmp.eq.s32.totalorder %v168_v13, %v636_v19  ;;  %vm213_vm5 = vcmp.eq.s32.totalorder %v167_v14, %v636_v19 }
  0x55   :  { %vm251_vm0 = vcmp.eq.s32.totalorder %v633_v17, 1  ;;  %vm211_vm10 = vcmp.eq.s32.totalorder %v166_v18, %v636_v19  ;;  %vm209_vm7 = vcmp.eq.s32.totalorder %v165_v20, %v636_v19 }
  0x56   :  { %vm216_vm1 = vcmp.eq.s32.totalorder %v168_v13, %v630_v16  ;;  %vm214_vm2 = vcmp.eq.s32.totalorder %v167_v14, %v630_v16  ;;  %vm283_vm6 = vmand %vm215_vm4, %vm251_vm0  ;;  %vm212_vm8 = vcmp.eq.s32.totalorder %v166_v18, %v630_v16  ;;  %vm210_vm12 = vcmp.eq.s32.totalorder %v165_v20, %v630_v16 }
  0x57   :  { %vm284_vm3 = vmand %vm216_vm1, %vm252_vm15  ;;  %vm208_vm1 = vcmp.eq.s32.totalorder %v164_v22, %v630_v16 }
  0x58   :  { %469 = vmatprep.subr.msk.mxu0 %vm284_vm3, %v560_v21  ;;  %vm282_vm9 = vmand %vm214_vm2, %vm252_vm15  ;;  %vm207_vm3 = vcmp.eq.s32.totalorder %v164_v22, %v636_v19 }
  0x59   :  { %470 = vmatpush1.msk.msra.mxu0 %vm283_vm6, %v560_v21  ;;  %vm281_vm11 = vmand %vm213_vm5, %vm251_vm0  ;;  %vm206_vm5 = vcmp.eq.s32.totalorder %v163_v23, %v630_v16 }
  0x5a   :  { %471 = vmatprep.subr.msk.mxu0 %vm282_vm9, %v560_v21  ;;  %vm280_vm13 = vmand %vm212_vm8, %vm252_vm15  ;;  %vm205_vm8 = vcmp.eq.s32.totalorder %v163_v23, %v636_v19 }
  0x5b   :  { %472 = vmatpush1.msk.msra.mxu0 %vm281_vm11, %v560_v21  ;;  %vm279_vm14 = vmand %vm211_vm10, %vm251_vm0  ;;  %vm204_vm10 = vcmp.eq.s32.totalorder %v162_v24, %v630_v16 }
  0x5c   :  { %473 = vmatprep.subr.msk.mxu0 %vm280_vm13, %v560_v21  ;;  %vm278_vm2 = vmand %vm210_vm12, %vm252_vm15  ;;  %vm203_vm12 = vcmp.eq.s32.totalorder %v162_v24, %v636_v19 }
  0x5d   :  { %474 = vmatpush1.msk.msra.mxu0 %vm279_vm14, %v560_v21  ;;  %vm277_vm4 = vmand %vm209_vm7, %vm251_vm0  ;;  %vm202_vm7 = vcmp.eq.s32.totalorder %v161_v25, %v630_v16 }
  0x5e   :  { %475 = vmatprep.subr.msk.mxu0 %vm278_vm2, %v560_v21  ;;  %vm276_vm6 = vmand %vm208_vm1, %vm252_vm15  ;;  %vm201_vm1 = vcmp.eq.s32.totalorder %v161_v25, %v636_v19 }
  0x5f   :  { %476 = vmatpush1.msk.msra.mxu0 %vm277_vm4, %v560_v21  ;;  %vm275_vm9 = vmand %vm207_vm3, %vm251_vm0  ;;  %vm200_vm3 = vcmp.eq.s32.totalorder %v160_v26, %v630_v16 }
  0x60   :  { %477 = vmatprep.subr.msk.mxu0 %vm276_vm6, %v560_v21  ;;  %vm274_vm11 = vmand %vm206_vm5, %vm252_vm15  ;;  %vm199_vm5 = vcmp.eq.s32.totalorder %v160_v26, %v636_v19 }
  0x61   :  { %478 = vmatpush1.msk.msra.mxu0 %vm275_vm9, %v560_v21  ;;  %vm273_vm13 = vmand %vm205_vm8, %vm251_vm0  ;;  %vm198_vm8 = vcmp.eq.s32.totalorder %v159_v27, %v630_v16 }
  0x62   :  { %479 = vmatprep.subr.msk.mxu0 %vm274_vm11, %v560_v21  ;;  %vm272_vm14 = vmand %vm204_vm10, %vm252_vm15  ;;  %vm197_vm10 = vcmp.eq.s32.totalorder %v159_v27, %v636_v19 }
  0x63   :  { %480 = vmatpush1.msk.msra.mxu0 %vm273_vm13, %v560_v21  ;;  %vm271_vm2 = vmand %vm203_vm12, %vm251_vm0  ;;  %vm196_vm12 = vcmp.eq.s32.totalorder %v158_v28, %v630_v16 }
  0x64   :  { %481 = vmatprep.subr.msk.mxu0 %vm272_vm14, %v560_v21  ;;  %vm270_vm4 = vmand %vm202_vm7, %vm252_vm15  ;;  %vm195_vm7 = vcmp.eq.s32.totalorder %v158_v28, %v636_v19 }
  0x65   :  { %482 = vmatpush1.msk.msra.mxu0 %vm271_vm2, %v560_v21  ;;  %vm269_vm6 = vmand %vm201_vm1, %vm251_vm0  ;;  %vm194_vm1 = vcmp.eq.s32.totalorder %v157_v29, %v630_v16 }
  0x66   :  { %483 = vmatprep.subr.msk.mxu0 %vm270_vm4, %v560_v21  ;;  %vm268_vm9 = vmand %vm200_vm3, %vm252_vm15  ;;  %vm193_vm3 = vcmp.eq.s32.totalorder %v157_v29, %v636_v19 }
  0x67   :  { %484 = vmatpush1.msk.msra.mxu0 %vm269_vm6, %v560_v21  ;;  %vm267_vm11 = vmand %vm199_vm5, %vm251_vm0  ;;  %vm192_vm5 = vcmp.eq.s32.totalorder %v156_v30, %v630_v16 }
  0x68   :  { %485 = vmatprep.subr.msk.mxu0 %vm268_vm9, %v560_v21  ;;  %vm266_vm13 = vmand %vm198_vm8, %vm252_vm15  ;;  %vm191_vm8 = vcmp.eq.s32.totalorder %v156_v30, %v636_v19 }
  0x69   :  { %486 = vmatpush1.msk.msra.mxu0 %vm267_vm11, %v560_v21  ;;  %vm265_vm14 = vmand %vm197_vm10, %vm251_vm0  ;;  %vm190_vm10 = vcmp.eq.s32.totalorder %v155_v31, %v630_v16 }
  0x6a   :  { %487 = vmatprep.subr.msk.mxu0 %vm266_vm13, %v560_v21  ;;  %vm264_vm2 = vmand %vm196_vm12, %vm252_vm15  ;;  %vm189_vm12 = vcmp.eq.s32.totalorder %v155_v31, %v636_v19 }
  0x6b   :  { %488 = vmatpush1.msk.msra.mxu0 %vm265_vm14, %v560_v21  ;;  %vm263_vm4 = vmand %vm195_vm7, %vm251_vm0  ;;  %vm188_vm7 = vcmp.eq.s32.totalorder %v154_v32, %v630_v16 }
  0x6c   :  { %489 = vmatprep.subr.msk.mxu0 %vm264_vm2, %v560_v21  ;;  %vm262_vm6 = vmand %vm194_vm1, %vm252_vm15  ;;  %vm187_vm1 = vcmp.eq.s32.totalorder %v154_v32, %v636_v19 }
  0x6d   :  { %490 = vmatpush1.msk.msra.mxu0 %vm263_vm4, %v560_v21  ;;  %vm261_vm9 = vmand %vm193_vm3, %vm251_vm0  ;;  %vm186_vm3 = vcmp.eq.s32.totalorder %v620_v4, %v630_v16 }
  0x6e   :  { %491 = vmatprep.subr.msk.mxu0 %vm262_vm6, %v560_v21  ;;  %vm260_vm11 = vmand %vm192_vm5, %vm252_vm15  ;;  %vm185_vm5 = vcmp.eq.s32.totalorder %v620_v4, %v636_v19 }
  0x6f   :  { %492 = vmatpush1.msk.msra.mxu0 %vm261_vm9, %v560_v21  ;;  %vm259_vm13 = vmand %vm191_vm8, %vm251_vm0  ;;  %vm248_vm8 = vcmp.eq.s32.totalorder %v184_v33, %v630_v16 }
  0x70   :  { %493 = vmatprep.subr.msk.mxu0 %vm260_vm11, %v560_v21  ;;  %vm258_vm14 = vmand %vm190_vm10, %vm252_vm15  ;;  %vm247_vm10 = vcmp.eq.s32.totalorder %v184_v33, %v636_v19 }
  0x71   :  { %494 = vmatpush1.msk.msra.mxu0 %vm259_vm13, %v560_v21  ;;  %vm257_vm2 = vmand %vm189_vm12, %vm251_vm0  ;;  %vm246_vm12 = vcmp.eq.s32.totalorder %v183_v34, %v630_v16 }
  0x72   :  { %495 = vmatprep.subr.msk.mxu0 %vm258_vm14, %v560_v21  ;;  %vm256_vm4 = vmand %vm188_vm7, %vm252_vm15  ;;  %vm245_vm7 = vcmp.eq.s32.totalorder %v183_v34, %v636_v19 }
  0x73   :  { %496 = vmatpush1.msk.msra.mxu0 %vm257_vm2, %v560_v21  ;;  %vm255_vm6 = vmand %vm187_vm1, %vm251_vm0  ;;  %vm244_vm1 = vcmp.eq.s32.totalorder %v182_v35, %v630_v16 }
  0x74   :  { %497 = vmatprep.subr.msk.mxu0 %vm256_vm4, %v560_v21  ;;  %vm254_vm9 = vmand %vm186_vm3, %vm252_vm15  ;;  %vm243_vm3 = vcmp.eq.s32.totalorder %v182_v35, %v636_v19 }
  0x75   :  { %498 = vmatpush1.msk.msra.mxu0 %vm255_vm6, %v560_v21  ;;  %vm253_vm11 = vmand %vm185_vm5, %vm251_vm0  ;;  %vm242_vm5 = vcmp.eq.s32.totalorder %v181_v36, %v630_v16 }
  0x76   :  { %499 = vmatprep.subr.msk.mxu0 %vm254_vm9, %v560_v21  ;;  %vm316_vm13 = vmand %vm248_vm8, %vm252_vm15  ;;  %vm241_vm8 = vcmp.eq.s32.totalorder %v181_v36, %v636_v19 }
  0x77   :  { %500 = vmatpush1.msk.msra.mxu0 %vm253_vm11, %v560_v21  ;;  %vm315_vm14 = vmand %vm247_vm10, %vm251_vm0  ;;  %vm240_vm10 = vcmp.eq.s32.totalorder %v180_v37, %v630_v16 }
  0x78   :  { %501 = vmatprep.subr.msk.mxu0 %vm316_vm13, %v560_v21  ;;  %vm314_vm2 = vmand %vm246_vm12, %vm252_vm15  ;;  %vm239_vm12 = vcmp.eq.s32.totalorder %v180_v37, %v636_v19 }
  0x79   :  { %502 = vmatpush2.msk.msra.mxu0 %vm315_vm14, %v560_v21  ;;  %vm313_vm4 = vmand %vm245_vm7, %vm251_vm0  ;;  %vm238_vm7 = vcmp.eq.s32.totalorder %v179_v38, %v630_v16 }
  0x7a   :  { %503 = vmatprep.subr.msk.mxu0 %vm314_vm2, %v560_v21  ;;  %vm312_vm6 = vmand %vm244_vm1, %vm252_vm15  ;;  %vm237_vm1 = vcmp.eq.s32.totalorder %v179_v38, %v636_v19 }
  0x7b   :  { %504 = vmatpush2.msk.msra.mxu0 %vm313_vm4, %v560_v21  ;;  %vm311_vm9 = vmand %vm243_vm3, %vm251_vm0  ;;  %vm236_vm3 = vcmp.eq.s32.totalorder %v178_v39, %v630_v16 }
  0x7c   :  { %505 = vmatprep.subr.msk.mxu0 %vm312_vm6, %v560_v21  ;;  %vm310_vm11 = vmand %vm242_vm5, %vm252_vm15  ;;  %vm235_vm5 = vcmp.eq.s32.totalorder %v178_v39, %v636_v19 }
  0x7d   :  { %506 = vmatpush2.msk.msra.mxu0 %vm311_vm9, %v560_v21  ;;  %vm309_vm13 = vmand %vm241_vm8, %vm251_vm0  ;;  %vm234_vm8 = vcmp.eq.s32.totalorder %v177_v40, %v630_v16 }
  0x7e   :  { %507 = vmatprep.subr.msk.mxu0 %vm310_vm11, %v560_v21  ;;  %vm308_vm14 = vmand %vm240_vm10, %vm252_vm15  ;;  %vm233_vm10 = vcmp.eq.s32.totalorder %v177_v40, %v636_v19 }
  0x7f   :  { %508 = vmatpush2.msk.msra.mxu0 %vm309_vm13, %v560_v21  ;;  %vm307_vm2 = vmand %vm239_vm12, %vm251_vm0  ;;  %vm232_vm12 = vcmp.eq.s32.totalorder %v176_v41, %v630_v16 }
  0x80   :  { %509 = vmatprep.subr.msk.mxu0 %vm308_vm14, %v560_v21  ;;  %vm306_vm4 = vmand %vm238_vm7, %vm252_vm15  ;;  %vm231_vm7 = vcmp.eq.s32.totalorder %v176_v41, %v636_v19 }
  0x81   :  { %510 = vmatpush2.msk.msra.mxu0 %vm307_vm2, %v560_v21  ;;  %vm305_vm6 = vmand %vm237_vm1, %vm251_vm0  ;;  %vm230_vm1 = vcmp.eq.s32.totalorder %v175_v42, %v630_v16 }
  0x82   :  { %511 = vmatprep.subr.msk.mxu0 %vm306_vm4, %v560_v21  ;;  %vm304_vm9 = vmand %vm236_vm3, %vm252_vm15  ;;  %vm229_vm3 = vcmp.eq.s32.totalorder %v175_v42, %v636_v19 }
  0x83   :  { %512 = vmatpush2.msk.msra.mxu0 %vm305_vm6, %v560_v21  ;;  %vm303_vm11 = vmand %vm235_vm5, %vm251_vm0  ;;  %vm228_vm5 = vcmp.eq.s32.totalorder %v174_v43, %v630_v16 }
  0x84   :  { %513 = vmatprep.subr.msk.mxu0 %vm304_vm9, %v560_v21  ;;  %vm302_vm13 = vmand %vm234_vm8, %vm252_vm15  ;;  %vm227_vm8 = vcmp.eq.s32.totalorder %v174_v43, %v636_v19 }
  0x85   :  { %514 = vmatpush2.msk.msra.mxu0 %vm303_vm11, %v560_v21  ;;  %vm301_vm14 = vmand %vm233_vm10, %vm251_vm0  ;;  %vm226_vm10 = vcmp.eq.s32.totalorder %v173_v44, %v630_v16 }
  0x86   :  { %515 = vmatprep.subr.msk.mxu0 %vm302_vm13, %v560_v21  ;;  %vm300_vm2 = vmand %vm232_vm12, %vm252_vm15  ;;  %vm225_vm12 = vcmp.eq.s32.totalorder %v173_v44, %v636_v19 }
  0x87   :  { %516 = vmatpush2.msk.msra.mxu0 %vm301_vm14, %v560_v21  ;;  %vm299_vm4 = vmand %vm231_vm7, %vm251_vm0  ;;  %vm224_vm7 = vcmp.eq.s32.totalorder %v172_v45, %v630_v16 }
  0x88   :  { %517 = vmatprep.subr.msk.mxu0 %vm300_vm2, %v560_v21  ;;  %vm298_vm6 = vmand %vm230_vm1, %vm252_vm15  ;;  %vm223_vm1 = vcmp.eq.s32.totalorder %v172_v45, %v636_v19 }
  0x89   :  { %518 = vmatpush2.msk.msra.mxu0 %vm299_vm4, %v560_v21  ;;  %vm297_vm9 = vmand %vm229_vm3, %vm251_vm0  ;;  %vm222_vm3 = vcmp.eq.s32.totalorder %v171_v46, %v630_v16 }
  0x8a   :  { %519 = vmatprep.subr.msk.mxu0 %vm298_vm6, %v560_v21  ;;  %vm296_vm11 = vmand %vm228_vm5, %vm252_vm15  ;;  %vm221_vm5 = vcmp.eq.s32.totalorder %v171_v46, %v636_v19 }
  0x8b   :  { %520 = vmatpush2.msk.msra.mxu0 %vm297_vm9, %v560_v21  ;;  %vm295_vm13 = vmand %vm227_vm8, %vm251_vm0  ;;  %vm220_vm8 = vcmp.eq.s32.totalorder %v170_v47, %v630_v16 }
  0x8c   :  { %521 = vmatprep.subr.msk.mxu0 %vm296_vm11, %v560_v21  ;;  %vm294_vm14 = vmand %vm226_vm10, %vm252_vm15  ;;  %vm219_vm10 = vcmp.eq.s32.totalorder %v170_v47, %v636_v19 }
  0x8d   :  { %522 = vmatpush2.msk.msra.mxu0 %vm295_vm13, %v560_v21  ;;  %vm293_vm2 = vmand %vm225_vm12, %vm251_vm0  ;;  %vm218_vm12 = vcmp.eq.s32.totalorder %v169_v48, %v630_v16 }
  0x8e   :  { %523 = vmatprep.subr.msk.mxu0 %vm294_vm14, %v560_v21  ;;  %vm292_vm4 = vmand %vm224_vm7, %vm252_vm15  ;;  %vm217_vm7 = vcmp.eq.s32.totalorder %v169_v48, %v636_v19 }
  0x8f   :  { %524 = vmatpush2.msk.msra.mxu0 %vm293_vm2, %v560_v21  ;;  %vm291_vm6 = vmand %vm223_vm1, %vm251_vm0 }
  0x90   :  { %525 = vmatprep.subr.msk.mxu0 %vm292_vm4, %v560_v21  ;;  %vm290_vm9 = vmand %vm222_vm3, %vm252_vm15 }
  0x91   :  { %526 = vmatpush2.msk.msra.mxu0 %vm291_vm6, %v560_v21  ;;  %vm289_vm11 = vmand %vm221_vm5, %vm251_vm0 }
  0x92   :  { %527 = vmatprep.subr.msk.mxu0 %vm290_vm9, %v560_v21  ;;  %vm288_vm13 = vmand %vm220_vm8, %vm252_vm15 }
  0x93   :  { %528 = vmatpush2.msk.msra.mxu0 %vm289_vm11, %v560_v21  ;;  %vm287_vm14 = vmand %vm219_vm10, %vm251_vm0 }
  0x94   :  { %529 = vmatprep.subr.msk.mxu0 %vm288_vm13, %v560_v21  ;;  %vm286_vm1 = vmand %vm218_vm12, %vm252_vm15 }
  0x95   :  { %530 = vmatpush2.msk.msra.mxu0 %vm287_vm14, %v560_v21  ;;  %vm285_vm2 = vmand %vm217_vm7, %vm251_vm0 }
  0x96   :  { %531 = vmatprep.subr.msk.mxu0 %vm286_vm1, %v560_v21 }
  0x97   :  { %532 = vmatpush2.msk.msra.mxu0 %vm285_vm2, %v560_v21 }
  0x98   :  { %448 = vmatmul.mubr.f32.vlgmr.msra.gmra.mxu0 %v381_v49 }
 0x158   :  { %v449_v50 = vpop.f32.mrf.mxu0 }
 0x159   :  { %454 = vst [vmem:[%s936_s2] sm:$0xff] %v449_v50 }
 0x15a   :  { %v451_v51 = vpop.f32.mrf.mxu0 }
 0x15b   :  { %455 = vst [vmem:[%s936_s2 + $0x8] sm:$0xff] %v451_v51 }
 0x15c PF:  { %460 = vsyncpa [#allocation3], 1 }

</bundles_post_ra>
